<compile_context>
chip_gen: v7x
topology: tpu7x:2x2x1
jax: 0.10.0
libtpu: 0.0.40
codegen_flags: <defaults>
</compile_context>

<pallas_src>
import math

import jax
import jax.numpy as jnp
from jax.experimental import pallas as pl
from jax.experimental.pallas import tpu as pltpu


def _learnable_sigmoid_kernel(slope_ref, x_ref, o_ref):
    # slope_ref: (1, F) f32    x_ref / o_ref: (tile_rows, F)
    s = slope_ref[...]
    x = x_ref[...]
    z = s * x                      # slope broadcast over rows; promotes to f32
    y = 1.2 * jax.nn.sigmoid(z)    # exp lowers to the EUP; VPU does mul/add
    o_ref[...] = y.astype(o_ref.dtype)


def learnable_sigmoid(x, slope, *, tile_rows=2048):
    """y = 1.2 * sigmoid(slope * x), slope broadcast on the last axis of x."""
    orig_shape = x.shape
    in_features = orig_shape[-1]
    assert slope.shape == (in_features,), (slope.shape, in_features)

    # Flatten all leading dims into a single row axis.
    rows = math.prod(orig_shape[:-1]) if len(orig_shape) > 1 else 1
    x2 = x.reshape(rows, in_features)

    # Sublane multiple depends on element width (f32: 8, bf16: 16, 8-bit: 32).
    itemsize = jnp.dtype(x.dtype).itemsize
    sub = {4: 8, 2: 16, 1: 32}.get(itemsize, 8)

    # Round tile_rows down to a sublane multiple; for small inputs don't
    # allocate a tile larger than the (rounded-up) row count.
    tile_rows = max(sub, (tile_rows // sub) * sub)
    tile_rows = min(tile_rows, pl.cdiv(rows, sub) * sub)

    # slope in f32 so low-precision x still computes the sigmoid in f32.
    slope2 = slope.astype(jnp.float32).reshape(1, in_features)

    grid = (pl.cdiv(rows, tile_rows),)  # Pallas masks the partial last block

    out = pl.pallas_call(
        _learnable_sigmoid_kernel,
        out_shape=jax.ShapeDtypeStruct((rows, in_features), x.dtype),
        grid_spec=pltpu.PrefetchScalarGridSpec(
            num_scalar_prefetch=0,
            grid=grid,
            in_specs=[
                # slope: same (1, F) block every step -> resident in VMEM
                pl.BlockSpec((1, in_features), lambda i: (0, 0)),
                # x: one large row-tile per grid step, full feature axis
                pl.BlockSpec((tile_rows, in_features), lambda i: (i, 0)),
            ],
            out_specs=pl.BlockSpec((tile_rows, in_features), lambda i: (i, 0)),
        ),
        compiler_params=pltpu.CompilerParams(
            dimension_semantics=("parallel",),
            # Headroom for 2x double-buffered (tile_rows, F) f32 tiles on all
            # generations (~8.5 MiB at 2048x257); stays far below the cap.
            vmem_limit_bytes=32 * 1024 * 1024,
        ),
    )(slope2, x2)

    return out.reshape(orig_shape)


if __name__ == "__main__":
    key = jax.random.PRNGKey(0)

    in_features = 257                      # module default
    batch, seq = 2, 8                      # small shapes: x is (B, T, F)
    x = jax.random.normal(key, (batch, seq, in_features), dtype=jnp.float32)

    # Deterministic parameter init matching nn.Parameter(torch.ones(in_features))
    slope = jnp.ones((in_features,), dtype=jnp.float32)

    y = learnable_sigmoid(x, slope)
    y = jax.block_until_ready(y)

    # Reference check in plain JAX.
    y_ref = 1.2 * jax.nn.sigmoid(slope * x)
    assert y.shape == x.shape
    assert jnp.allclose(y, y_ref, atol=1e-5, rtol=1e-5)

    print("KERNEL_OK")
</pallas_src>

<mosaic_0001>
module attributes {stable_mosaic.version = 11 : i64} {
  func.func @_learnable_sigmoid_kernel(%arg0: i32, %arg1: memref<1x257xf32, #tpu.memory_space<vmem>>, %arg2: memref<16x257xf32, #tpu.memory_space<vmem>>, %arg3: memref<16x257xf32, #tpu.memory_space<vmem>>) attributes {dimension_semantics = [#tpu.dimension_semantics<parallel>], iteration_bounds = array<i64: 1>, scalar_prefetch = 0 : i64, scratch_operands = 0 : i64, tpu.core_type = #tpu.core_type<tc>, window_params = [{pipeline_mode = #tpu.pipeline_mode<synchronous>, transform_indices = @transform_0, window_bounds = array<i64: 1, 257>}, {transform_indices = @transform_1, window_bounds = array<i64: 16, 257>}, {transform_indices = @transform_2, window_bounds = array<i64: 16, 257>}]} {
    %c0 = arith.constant 0 : index
    %c0_0 = arith.constant 0 : index
    %0 = vector.load %arg1[%c0, %c0_0] : memref<1x257xf32, #tpu.memory_space<vmem>>, vector<1x257xf32>
    %c0_1 = arith.constant 0 : index
    %c0_2 = arith.constant 0 : index
    %1 = vector.load %arg2[%c0_1, %c0_2] : memref<16x257xf32, #tpu.memory_space<vmem>>, vector<16x257xf32>
    %2 = vector.broadcast %0 : vector<1x257xf32> to vector<16x257xf32>
    %3 = arith.mulf %2, %1 : vector<16x257xf32>
    %4 = arith.negf %3 : vector<16x257xf32>
    %5 = math.exp %4 : vector<16x257xf32>
    %cst = arith.constant 1.000000e+00 : f32
    %6 = vector.broadcast %cst : f32 to vector<16x257xf32>
    %7 = arith.addf %6, %5 : vector<16x257xf32>
    %8 = arith.divf %6, %7 : vector<16x257xf32>
    %cst_3 = arith.constant 1.200000e+00 : f32
    %9 = vector.broadcast %cst_3 : f32 to vector<16x257xf32>
    %10 = arith.mulf %9, %8 : vector<16x257xf32>
    %c0_4 = arith.constant 0 : index
    %c0_5 = arith.constant 0 : index
    %11 = vector.load %arg3[%c0_4, %c0_5] : memref<16x257xf32, #tpu.memory_space<vmem>>, vector<16x257xf32>
    tpu.vector_store %arg3[%c0_4, %c0_5], %10 {strides = array<i32>} : memref<16x257xf32, #tpu.memory_space<vmem>>, vector<16x257xf32>,
    return
  }
  func.func @transform_0(%arg0: i32) -> (i32, i32) {
    %c0_i32 = arith.constant 0 : i32
    %c0_i32_0 = arith.constant 0 : i32
    %c0_i32_1 = arith.constant 0 : i32
    return %c0_i32, %c0_i32_0 : i32, i32
  }
  func.func @transform_1(%arg0: i32) -> (i32, i32) {
    %c0_i32 = arith.constant 0 : i32
    %c0_i32_0 = arith.constant 0 : i32
    return %arg0, %c0_i32 : i32, i32
  }
  func.func @transform_2(%arg0: i32) -> (i32, i32) {
    %c0_i32 = arith.constant 0 : i32
    %c0_i32_0 = arith.constant 0 : i32
    return %arg0, %c0_i32 : i32, i32
  }
}

</mosaic_0001>

<bundles_post_ra>
// kernel: tpu_custom_call.1
= control target key start
LH: loop header
LB: loop body
LE: loop exit
PB: predicated region body
PF: predicated region fallthrough
CT: control target
= control target key end

     0   :  { %7 = vsyncpa [#allocation3], 0  ;;  %s312_s0 = inlined_call_operand.hbm [shape: f32[1,257], index: 0, kind: input, shape index: {}]   ;;  %s313_s1 = inlined_call_operand.hbm [shape: f32[16,257], index: 1, kind: input, shape index: {}]   ;;  %s314_s2 = inlined_call_operand.hbm [shape: f32[16,257], index: 2, kind: output, shape index: {}]  }
   0x1   :  { %8 = vsyncpa [#allocation6], 0 }
   0x2   :  { %9 = vsyncpa [#allocation4], 0  ;;  %s241_s9 = smov [#allocation2]   ;;  %s242_s11 = smov [#allocation5]  }
   0x3   :  { %s16_s10 = sshll.u32 %s241_s9, 4  ;;  %s25_s12 = sshll.u32 %s242_s11, 4  ;;  %s17_s10 = int_to_ptr.vmem [resolvable:$true] %s16_s10  ;;  %s261_s12 = int_to_ptr.vmem [resolvable:$true] %s25_s12 }
   0x4   :  { %s169_s15 = scalar_lea.hbm %s312_s0, 48 }
   0x5   :  { %p170_p0 = scmp.ne.s32.totalorder %s312_s0, %s169_s15  ;;  %p173_p1 = scmp.lt.u32.totalorder %s169_s15, %s312_s0 }
   0x7   :  { %p175_p2 = pnand %p173_p1, %p170_p0 }
   0x9   :  { %178 = shalt.err (!%p175_p2)
}
   0xa   :  { %s179_s20 = scalar_lea.vmem %s17_s10, 48  ;;  %s183_s21 = scalar_lea.vmem %s17_s10, 64 }
   0xb   :  { %p180_p3 = scmp.ne.s32.totalorder %s17_s10, %s179_s20  ;;  %p184_p4 = scmp.lt.s32.totalorder %s17_s10, %s17_s10 }
   0xc   :  { %p185_p5 = scmp.lt.s32.totalorder %s183_s21, %s179_s20 }
   0xe   :  { %p186_p6 = por %p185_p5, %p184_p4 }
  0x10   :  { %p187_p7 = pnand %p186_p6, %p180_p3 }
  0x12   :  { %190 = shalt.err (!%p187_p7)
}
  0x13   :  { %19 = dma.hbm_to_vmem [thread:$0]  %s312_s0, 48, %s17_s10, [#allocation3]  }
  0x14   :  { %s191_s26 = scalar_lea.hbm %s313_s1, 768 }
  0x15   :  { %p192_p8 = scmp.ne.s32.totalorder %s313_s1, %s191_s26  ;;  %p195_p9 = scmp.lt.u32.totalorder %s191_s26, %s313_s1 }
  0x17   :  { %p197_p10 = pnand %p195_p9, %p192_p8 }
  0x19   :  { %200 = shalt.err (!%p197_p10)
}
  0x1a   :  { %s201_s3 = scalar_lea.vmem %s261_s12, 768  ;;  %p206_p12 = scmp.lt.s32.totalorder %s261_s12, %s261_s12 }
  0x1b   :  { %p202_p11 = scmp.ne.s32.totalorder %s261_s12, %s201_s3  ;;  %p207_p13 = scmp.lt.s32.totalorder %s201_s3, %s201_s3 }
  0x1d   :  { %p208_p0 = por %p207_p13, %p206_p12 }
  0x1f   :  { %p209_p1 = pnand %p208_p0, %p202_p11 }
  0x21   :  { %212 = shalt.err (!%p209_p1)
}
  0x22   :  { %s243_s0 = smov 384   ;;  %s244_s4 = smov 24  }
  0x23   :  { %31 = dma.hbm_to_vmem [thread:$0]  %s313_s1, 768, %s261_s12, [#allocation6], %s243_s0, %s243_s0, %s244_s4  }
  0x24   :  { %235 = dma.done.wait [#allocation3], 48  }
  0x25   :  { %236 = vsyncadd [#allocation3], 4294967248 }
  0x26   :  { %237 = dma.done.wait [#allocation6], 768  }
  0x27   :  { %238 = vsyncadd [#allocation6], 4294966528  ;;  %v46_v0 = vlaneseq  ;;  %v38_v5 = vld [vmem:[#allocation2] sm:$0x7]  ;;  %v39_v6 = vld [vmem:[#allocation5] sm:$0xff]  ;;  %vm111_vm0 = vcmask 7168  }
  0x28   :  { %v40_v7 = vld [vmem:[#allocation5 + $0x8] sm:$0xff]  ;;  %v41_v10 = vld [vmem:[#allocation5 + $0x10] sm:$0xff]  ;;  %v42_v12 = vld [vmem:[#allocation5 + $0x18] sm:$0xff]  ;;  %s245_s1 = smov [#allocation7]  }
  0x29   :  { %v47_v1 = vshrl.u32 %v46_v0, 7  ;;  %v43_v13 = vld [vmem:[#allocation5 + $0x20] sm:$0xff]  ;;  %v44_v14 = vld [vmem:[#allocation5 + $0x28] sm:$0xff]  ;;  %s121_s7 = sshll.u32 %s245_s1, 4  ;;  %s122_s7 = int_to_ptr.vmem [resolvable:$true] %s121_s7 }
  0x2a   :  { %s213_s8 = scalar_lea.vmem %s122_s7, 768  ;;  %p218_p3 = scmp.lt.s32.totalorder %s122_s7, %s122_s7 }
  0x2b   :  { %v48_v2 = vsub.s32 0, %v47_v1  ;;  %v52_v3 = vsub.s32 1, %v47_v1  ;;  %v56_v4 = vsub.s32 2, %v47_v1  ;;  %p214_p2 = scmp.ne.s32.totalorder %s122_s7, %s213_s8  ;;  %p219_p4 = scmp.lt.s32.totalorder %s213_s8, %s213_s8 }
  0x2d   :  { %v49_v8 = vrot.slane %v38_v5, %v48_v2  ;;  %v53_v9 = vrot.slane %v38_v5, %v52_v3  ;;  %v57_v11 = vrot.slane %v38_v5, %v56_v4  ;;  %p220_p5 = por %p219_p4, %p218_p3 }
  0x2f   :  { %v61_v15 = vmul.f32 %v49_v8, %v39_v6  ;;  %v62_v16 = vmul.f32 %v53_v9, %v40_v7  ;;  %v63_v17 = vmul.f32 %v57_v11, %v41_v10  ;;  %v64_v18 = vmul.f32 %v49_v8, %v42_v12  ;;  %p221_p6 = pnand %p220_p5, %p214_p2 }
  0x30   :  { %v65_v19 = vmul.f32 %v53_v9, %v43_v13  ;;  %v66_v20 = vmul.f32 %v57_v11, %v44_v14 }
  0x31   :  { %v134_v21 = vmul.f32 -1.442695, %v61_v15  ;;  %v135_v22 = vmul.f32 -1.442695, %v62_v16  ;;  %v136_v23 = vmul.f32 -1.442695, %v63_v17 }
  0x32   :  { %v137_v24 = vmul.f32 -1.442695, %v64_v18  ;;  %v138_v25 = vmul.f32 -1.442695, %v65_v19  ;;  %v139_v26 = vmul.f32 -1.442695, %v66_v20 }
  0x33   :  { %145 = vpow2.f32 %v134_v21 }
  0x34   :  { %147 = vpow2.f32 %v135_v22 }
  0x35   :  { %149 = vpow2.f32 %v136_v23 }
  0x36   :  { %151 = vpow2.f32 %v137_v24 }
  0x37   :  { %153 = vpow2.f32 %v138_v25 }
  0x38   :  { %155 = vpow2.f32 %v139_v26 }
  0x3d   :  { %v146_v27 = vpop.eup %145 }
  0x3e   :  { %v148_v28 = vpop.eup %147  ;;  %v85_v29 = vadd.f32 1.0, %v146_v27 }
  0x3f   :  { %v150_v30 = vpop.eup %149  ;;  %v86_v31 = vadd.f32 1.0, %v148_v28 }
  0x40   :  { %v152_v32 = vpop.eup %151  ;;  %157 = vrcp.f32 %v85_v29  ;;  %v87_v33 = vadd.f32 1.0, %v150_v30 }
  0x41   :  { %v154_v34 = vpop.eup %153  ;;  %159 = vrcp.f32 %v86_v31  ;;  %v88_v35 = vadd.f32 1.0, %v152_v32 }
  0x42   :  { %v156_v36 = vpop.eup %155  ;;  %161 = vrcp.f32 %v87_v33  ;;  %v89_v37 = vadd.f32 1.0, %v154_v34 }
  0x43   :  { %163 = vrcp.f32 %v88_v35  ;;  %v90_v38 = vadd.f32 1.0, %v156_v36 }
  0x44   :  { %165 = vrcp.f32 %v89_v37 }
  0x45   :  { %167 = vrcp.f32 %v90_v38 }
  0x4a   :  { %v158_v39 = vpop.eup %157 }
  0x4b   :  { %v160_v40 = vpop.eup %159  ;;  %v103_v41 = vmul.f32 1.2, %v158_v39 }
  0x4c   :  { %v162_v42 = vpop.eup %161  ;;  %v104_v43 = vmul.f32 1.2, %v160_v40 }
  0x4d   :  { %v164_v44 = vpop.eup %163  ;;  %109 = vst [vmem:[#allocation7] sm:$0xff] %v103_v41  ;;  %v105_v45 = vmul.f32 1.2, %v162_v42 }
  0x4e   :  { %v166_v46 = vpop.eup %165  ;;  %110 = vst [vmem:[#allocation7 + $0x8] sm:$0xff] %v104_v43  ;;  %v106_v47 = vmul.f32 1.2, %v164_v44 }
  0x4f   :  { %v168_v48 = vpop.eup %167  ;;  %112 = vst.msk [vmem:[#allocation7 + $0x10] sm:$0xff] %vm111_vm0, %v105_v45  ;;  %v107_v49 = vmul.f32 1.2, %v166_v46 }
  0x50   :  { %113 = vst [vmem:[#allocation7 + $0x18] sm:$0xff] %v106_v47  ;;  %v108_v50 = vmul.f32 1.2, %v168_v48 }
  0x51   :  { %114 = vst [vmem:[#allocation7 + $0x20] sm:$0xff] %v107_v49 }
  0x52   :  { %115 = vst.msk [vmem:[#allocation7 + $0x28] sm:$0xff] %vm111_vm0, %v108_v50 }
  0x53   :  { %224 = shalt.err (!%p221_p6)
}
  0x54   :  { %s225_s11 = scalar_lea.hbm %s314_s2, 768 }
  0x55   :  { %p226_p7 = scmp.ne.s32.totalorder %s314_s2, %s225_s11  ;;  %p229_p8 = scmp.lt.u32.totalorder %s225_s11, %s314_s2 }
  0x57   :  { %p231_p9 = pnand %p229_p8, %p226_p7 }
  0x59   :  { %234 = shalt.err (!%p231_p9)
}
  0x5a   :  { %127 = dma.vmem_to_hbm [thread:$0]  %s122_s7, 768, %s314_s2, [#allocation4], %s243_s0, %s243_s0, %s244_s4  }
  0x5b   :  { %239 = dma.done.wait [#allocation4], 768  }
  0x5c   :  { %240 = vsyncadd [#allocation4], 4294966528 }
  0x5d   :  { %131 = vsyncpa [#allocation3], 1 }
  0x5e   :  { %132 = vsyncpa [#allocation6], 1 }
  0x5f   :  { %133 = vsyncpa [#allocation4], 1 }

</bundles_post_ra>
